<compile_context>
chip_gen: v7x
topology: tpu7x:2x2x1
jax: 0.10.0
libtpu: 0.0.40
codegen_flags: <defaults>
</compile_context>

<pallas_src>
import numpy as np
import jax
import jax.numpy as jnp
from jax import lax
from jax.experimental import pallas as pl
from jax.experimental.pallas import tpu as pltpu


def _round_up(x, m):
    return ((x + m - 1) // m) * m


def _tpu_config():
    """Per-generation matmul tile caps + scoped-VMEM limit.

    Returns (tm_cap, tn_cap, tk_cap, vmem_limit_bytes | None).
    Tiles are sized so tm*tn/(tm+tn) clears each generation's HBM/MXU ridge.
    """
    try:
        kind = jax.devices()[0].device_kind.lower()
    except Exception:
        kind = ""
    mib = 1024 * 1024
    if "v7" in kind:      # 64 MiB VMEM/TC, ~3.2 TB/s HBM -> ridge ~310 f/B
        return 512, 1024, 512, 48 * mib
    if "v6" in kind:      # 128 MiB VMEM, ~1.4 TB/s HBM -> ridge ~680 f/B
        return 1024, 2048, 512, 96 * mib
    if "v5" in kind:      # v5e/v5p: ridge ~240 f/B
        return 512, 512, 512, 64 * mib
    return 512, 512, 512, None


# ---------------------------------------------------------------------------
# Pallas kernel 1: tiled projection matmul (stand-in for the CLIP feature heads).
#   bf16 MXU operands (activations cast in-kernel) / f32 accumulation in VMEM.
# ---------------------------------------------------------------------------
def _matmul_kernel(x_ref, w_ref, o_ref, acc_ref):
    @pl.when(pl.program_id(2) == 0)
    def _init():
        acc_ref[...] = jnp.zeros_like(acc_ref)

    acc_ref[...] += jnp.dot(x_ref[...].astype(jnp.bfloat16), w_ref[...],
                            preferred_element_type=jnp.float32)

    @pl.when(pl.program_id(2) == pl.num_programs(2) - 1)
    def _store():
        o_ref[...] = acc_ref[...].astype(o_ref.dtype)


def pallas_matmul(x, w, *, out_dtype=jnp.bfloat16):
    """x @ w on the MXU (bf16 operands, f32 accumulation, `out_dtype` result)."""
    m, k = x.shape
    k2, n = w.shape
    assert k == k2
    tm_cap, tn_cap, tk_cap, vmem_limit = _tpu_config()

    # K: use the full K when it fits (full-dim BlockSpec exception -> no padding),
    # otherwise a 128-multiple divisor of the 128-padded K.
    if k <= tk_cap:
        tk, kp = k, k
    else:
        kp = _round_up(k, 128)
        tk = next(t for t in range(tk_cap, 0, -128) if kp % t == 0)
    # M: the (large) activation operand is never padded unless M is both big and ragged.
    if m <= tm_cap:
        tm, mp = m, m
    else:
        tm, mp = tm_cap, _round_up(m, tm_cap)
    # N: pad only the small weight operand up to a lane-dense 128 multiple; use a
    # full-N tile when it fits so each activation tile streams exactly once per K step.
    npad = _round_up(n, 128)
    if npad <= tn_cap:
        tn, np_ = npad, npad
    else:
        tn, np_ = tn_cap, _round_up(npad, tn_cap)

    xk = x if (mp, kp) == (m, k) else jnp.pad(x, ((0, mp - m), (0, kp - k)))
    wb = w.astype(jnp.bfloat16)
    if (kp, np_) != (k, n):
        wb = jnp.pad(wb, ((0, kp - k), (0, np_ - n)))

    cp_kwargs = dict(dimension_semantics=("parallel", "parallel", "arbitrary"))
    if vmem_limit is not None:
        cp_kwargs["vmem_limit_bytes"] = vmem_limit

    out = pl.pallas_call(
        _matmul_kernel,
        out_shape=jax.ShapeDtypeStruct((mp, np_), out_dtype),
        grid=(mp // tm, np_ // tn, kp // tk),
        in_specs=[pl.BlockSpec((tm, tk), lambda i, j, kk: (i, kk)),
                  pl.BlockSpec((tk, tn), lambda i, j, kk: (kk, j))],
        out_specs=pl.BlockSpec((tm, tn), lambda i, j, kk: (i, j)),
        scratch_shapes=[pltpu.VMEM((tm, tn), jnp.float32)],
        compiler_params=pltpu.CompilerParams(**cp_kwargs),
        cost_estimate=pl.CostEstimate(
            flops=2 * mp * np_ * kp,
            transcendentals=0,
            bytes_accessed=mp * kp * x.dtype.itemsize + kp * np_ * 2
                           + mp * np_ * jnp.dtype(out_dtype).itemsize),
    )(xk, wb)
    return out[:m, :n]


# ---------------------------------------------------------------------------
# Pallas kernel 2: fused training-path similarity logits (sims_cf, sims_tc, sims_tf),
#   gridded over the batch ('a') axis.
# ---------------------------------------------------------------------------
def _l2norm(x):
    # x * rsqrt(sum x^2): the rsqrt runs on the EUP slot, overlapping VPU work.
    return x * lax.rsqrt(jnp.sum(x * x, axis=-1, keepdims=True) + 1e-12)


def _topk_sum_lastaxis(s, k):
    # Batched "sum of the k largest entries along the last axis"; matches
    # lax.top_k(...)[0].sum(-1) in f32 (exact first-index tie-break).  fori_loop
    # bounds live ranges / instruction count for realistic frame counts.
    n = s.shape[-1]
    iota = lax.broadcasted_iota(jnp.int32, s.shape, s.ndim - 1)

    def body(_, carry):
        cur, total = carry
        m = jnp.max(cur, axis=-1, keepdims=True)
        first = jnp.min(jnp.where(cur == m, iota, n), axis=-1, keepdims=True)
        cur = jnp.where(iota == first, jnp.float32(-1e30), cur)   # cosines are in [-1, 1]
        return cur, total + m

    total0 = jnp.zeros(s.shape[:-1] + (1,), jnp.float32)
    _, total = lax.fori_loop(0, k, body, (s, total0), unroll=True)
    return total                                                   # (..., 1)


def _make_sims_kernel(B, C, F, ba):
    BF, baC = B * F, ba * C
    kc, kf = C // 2, F // 2

    def kernel(t_ref, c2_ref, f2_ref, c3_ref, f3_ref, mask_ref,
               cf_ref, tc_ref, tf_ref):
        # ---- sims_cf: one flat (baC, D) x (D, BF) bf16 MXU matmul + masked
        #      block-sum via two tiny indicator matmuls (no sub-(8,128) slicing). ----
        cn_rows = _l2norm(c2_ref[...])                       # (baC, D), this block's captions
        fn = _l2norm(f2_ref[...])                            # (BF, D), all frames
        s_cf = lax.dot_general(cn_rows.astype(jnp.bfloat16), fn.astype(jnp.bfloat16),
                               (((1,), (1,)), ((), ())),
                               preferred_element_type=jnp.float32)   # (baC, BF)
        masked = s_cf * mask_ref[...]
        rr = lax.broadcasted_iota(jnp.int32, (ba, baC), 0)
        rg = lax.broadcasted_iota(jnp.int32, (ba, baC), 1) // C
        R = (rr == rg).astype(jnp.float32)                   # (ba, baC) row-group summer
        sg = lax.broadcasted_iota(jnp.int32, (BF, B), 0) // F
        sc = lax.broadcasted_iota(jnp.int32, (BF, B), 1)
        S = (sg == sc).astype(jnp.float32)                   # (BF, B) col-group summer
        cf_ref[...] = jnp.dot(jnp.dot(R, masked, preferred_element_type=jnp.float32),
                              S, preferred_element_type=jnp.float32)   # (ba, B)

        # ---- sims_tc: batched bf16 MXU matmul + vectorized top-(C//2) sum. ----
        tn = _l2norm(t_ref[...])                             # (ba, D)
        cn3 = _l2norm(_l2norm(c3_ref[...]))                  # (B, C, D) (double-norm as ref)
        tn_b = jnp.broadcast_to(tn.astype(jnp.bfloat16)[None], (B, ba, D := tn.shape[-1]))
        s_tc = jnp.einsum('bad,bcd->bac', tn_b, cn3.astype(jnp.bfloat16),
                          preferred_element_type=jnp.float32)          # (B, ba, C)
        tc_ref[...] = _topk_sum_lastaxis(s_tc, kc)                     # (B, ba, 1)

        # ---- sims_tf: batched bf16 MXU matmul + vectorized top-(F//2) sum. ----
        tn2 = _l2norm(tn)
        fn3 = _l2norm(_l2norm(f3_ref[...]))                  # (B, F, D)
        tn2_b = jnp.broadcast_to(tn2.astype(jnp.bfloat16)[None], (B, ba, D))
        s_tf = jnp.einsum('bad,bfd->baf', tn2_b, fn3.astype(jnp.bfloat16),
                          preferred_element_type=jnp.float32)          # (B, ba, F)
        tf_ref[...] = _topk_sum_lastaxis(s_tf, kf)                     # (B, ba, 1)

    return kernel


def clip_stochastic_sims(t_feats, c_feats, f_feats, mask_cf):
    B, C, D = c_feats.shape
    F = f_feats.shape[1]
    t2 = t_feats.astype(jnp.float32)
    c3 = c_feats.astype(jnp.float32)
    f3 = f_feats.astype(jnp.float32)
    c2 = c3.reshape(B * C, D)
    f2 = f3.reshape(B * F, D)
    # lane-major mask layout done in the wrapper (no in-kernel transpose/reshape)
    mask2 = mask_cf.transpose(0, 2, 1, 3).reshape(B * C, B * F).astype(jnp.float32)

    # Grid over the batch/query axis: shards across v7x's two TensorCores and bounds
    # per-step VMEM at realistic B.  (Block sizes stay (8,128)-legal: ba is either 8
    # or the full batch.)
    ba = 8 if (B % 8 == 0) else B
    steps = B // ba
    kern = _make_sims_kernel(B=B, C=C, F=F, ba=ba)

    _, _, _, vmem_limit = _tpu_config()
    cp_kwargs = dict(dimension_semantics=("parallel",))
    if vmem_limit is not None:
        cp_kwargs["vmem_limit_bytes"] = vmem_limit

    cf, tc_raw, tf_raw = pl.pallas_call(
        kern,
        out_shape=(jax.ShapeDtypeStruct((B, B), jnp.float32),
                   jax.ShapeDtypeStruct((B, B, 1), jnp.float32),
                   jax.ShapeDtypeStruct((B, B, 1), jnp.float32)),
        grid=(steps,),
        in_specs=[pl.BlockSpec((ba, D), lambda i: (i, 0)),            # text rows
                  pl.BlockSpec((ba * C, D), lambda i: (i, 0)),        # caption rows (cf)
                  pl.BlockSpec((B * F, D), lambda i: (0, 0)),         # all frames, flat
                  pl.BlockSpec((B, C, D), lambda i: (0, 0, 0)),       # captions, 3-D (tc)
                  pl.BlockSpec((B, F, D), lambda i: (0, 0, 0)),       # frames, 3-D (tf)
                  pl.BlockSpec((ba * C, B * F), lambda i: (i, 0))],   # DTW mask rows
        out_specs=(pl.BlockSpec((ba, B), lambda i: (i, 0)),
                   pl.BlockSpec((B, ba, 1), lambda i: (0, i, 0)),
                   pl.BlockSpec((B, ba, 1), lambda i: (0, i, 0))),
        compiler_params=pltpu.CompilerParams(**cp_kwargs),
    )(t2, c2, f2, c3, f3, mask2)
    # sims_tc / sims_tf were computed in (caption-batch, text-batch) order; flip to (a, b).
    return cf, tc_raw[:, :, 0].T, tf_raw[:, :, 0].T


# ---------------------------------------------------------------------------
# Host-side glue: DTW alignment mask (binary mask on the optimal warping path).
# ---------------------------------------------------------------------------
def dtw_path_mask(c_feats, f_feats):
    c = np.asarray(c_feats, np.float64)
    f = np.asarray(f_feats, np.float64)
    c = c / np.linalg.norm(c, axis=-1, keepdims=True)
    f = f / np.linalg.norm(f, axis=-1, keepdims=True)
    B, C, _ = c.shape
    F = f.shape[1]
    mask = np.zeros((B, B, C, F), np.float32)
    for a in range(B):
        for b in range(B):
            cost = 1.0 - c[a] @ f[b].T
            acc = np.full((C, F), np.inf)
            acc[0, 0] = cost[0, 0]
            for i in range(1, C):
                acc[i, 0] = acc[i - 1, 0] + cost[i, 0]
            for j in range(1, F):
                acc[0, j] = acc[0, j - 1] + cost[0, j]
            for i in range(1, C):
                for j in range(1, F):
                    acc[i, j] = cost[i, j] + min(acc[i - 1, j],
                                                 acc[i, j - 1],
                                                 acc[i - 1, j - 1])
            i, j = C - 1, F - 1
            mask[a, b, i, j] = 1.0
            while i > 0 or j > 0:
                if i == 0:
                    j -= 1
                elif j == 0:
                    i -= 1
                else:
                    step = int(np.argmin([acc[i - 1, j - 1], acc[i - 1, j], acc[i, j - 1]]))
                    if step == 0:
                        i -= 1
                        j -= 1
                    elif step == 1:
                        i -= 1
                    else:
                        j -= 1
                mask[a, b, i, j] = 1.0
    return jnp.asarray(mask)


# ---------------------------------------------------------------------------
# Pure-JAX reference (mirrors the PyTorch forward, is_train=True branch).
# ---------------------------------------------------------------------------
def _reference(t, c, f, mask):
    def nrm(x):
        return x / jnp.linalg.norm(x, axis=-1, keepdims=True)
    cn, fn, tn = nrm(c), nrm(f), nrm(t)
    sims_cf = jnp.einsum('acd,bfd->abcf', cn, fn)
    sims_cf = jnp.sum(sims_cf * mask, axis=(2, 3))
    cn2, tn2, fn2 = nrm(cn), nrm(tn), nrm(fn)
    sims_tc = jnp.einsum('ad,bcd->abc', tn, cn2)
    sims_tc = lax.top_k(sims_tc, c.shape[1] // 2)[0].sum(-1)
    sims_tf = jnp.einsum('ad,bfd->abf', tn2, fn2)
    sims_tf = lax.top_k(sims_tf, f.shape[1] // 2)[0].sum(-1)
    return sims_cf, sims_tc, sims_tf


if __name__ == "__main__":
    key = jax.random.PRNGKey(0)
    B, NUM_FRAMES, RES, EMBED, VOCAB = 2, 8, 16, 32, 64
    C = NUM_FRAMES // 2
    k_video, k_cap, k_seq, k_wimg, k_wtxt = jax.random.split(key, 5)

    # layout: video is (B, num_frames, 3, H, W) == NCHW per frame.
    video = jax.random.normal(k_video, (B, NUM_FRAMES, 3, RES, RES), jnp.float32)
    cap = jax.random.normal(k_cap, (B, VOCAB), jnp.float32)          # proxy for tokenized caption
    seq_cap = jax.random.normal(k_seq, (C, B, VOCAB), jnp.float32)   # proxy for per-segment captions

    # Deterministic synthetic "CLIP" projection weights.
    w_img = 0.02 * jax.random.normal(k_wimg, (3 * RES * RES, EMBED), jnp.float32)
    w_txt = 0.02 * jax.random.normal(k_wtxt, (VOCAB, EMBED), jnp.float32)

    # Image features: one tiled matmul over all B*NUM_FRAMES frames (bf16 out).
    f_feats = pallas_matmul(video.reshape(B * NUM_FRAMES, -1), w_img)
    f_feats = f_feats.astype(jnp.float32).reshape(B, NUM_FRAMES, EMBED)

    # Text features: caption + all C segment captions fused into ONE matmul launch.
    txt_rows = jnp.concatenate([cap, seq_cap.reshape(C * B, VOCAB)], axis=0)
    txt_feats = pallas_matmul(txt_rows, w_txt).astype(jnp.float32)
    t_feats = txt_feats[:B]
    c_feats = txt_feats[B:].reshape(C, B, EMBED).transpose(1, 0, 2)

    # DTW alignment mask (host glue), then the fused similarity kernel.
    mask_cf = dtw_path_mask(c_feats, f_feats)
    sims_cf, sims_tc, sims_tf = clip_stochastic_sims(t_feats, c_feats, f_feats, mask_cf)
    jax.block_until_ready((sims_cf, sims_tc, sims_tf))

    ref_cf, ref_tc, ref_tf = _reference(t_feats, c_feats, f_feats, mask_cf)
    # Both the kernel and the reference use bf16 MXU operands with f32 accumulation
    # (TPU default matmul precision), so 2e-3 comfortably covers the residual
    # accumulation-order / rsqrt-vs-divide differences.
    tol = dict(atol=2e-3, rtol=2e-3)
    assert jnp.allclose(sims_cf, ref_cf, **tol), "sims_cf mismatch"
    assert jnp.allclose(sims_tc, ref_tc, **tol), "sims_tc mismatch"
    assert jnp.allclose(sims_tf, ref_tf, **tol), "sims_tf mismatch"
    print("KERNEL_OK")
</pallas_src>

<mosaic_0001>
module attributes {stable_mosaic.version = 11 : i64} {
  func.func @_matmul_kernel(%arg0: i32, %arg1: i32, %arg2: i32, %arg3: memref<16x384xf32, #tpu.memory_space<vmem>>, %arg4: memref<384x128xbf16, #tpu.memory_space<vmem>>, %arg5: memref<16x128xbf16, #tpu.memory_space<vmem>>, %arg6: memref<16x128xf32, #tpu.memory_space<vmem>>) attributes {dimension_semantics = [#tpu.dimension_semantics<parallel>, #tpu.dimension_semantics<parallel>, #tpu.dimension_semantics<arbitrary>], iteration_bounds = array<i64: 1, 1, 2>, scalar_prefetch = 0 : i64, scratch_operands = 1 : i64, tpu.core_type = #tpu.core_type<tc>, window_params = [{transform_indices = @transform_0, window_bounds = array<i64: 16, 384>}, {transform_indices = @transform_1, window_bounds = array<i64: 384, 128>}, {transform_indices = @transform_2, window_bounds = array<i64: 16, 128>}]} {
    %c0_i32 = arith.constant 0 : i32
    %0 = arith.cmpi eq, %arg2, %c0_i32 : i32
    %1 = arith.extui %0 : i1 to i32
    %c0_i32_0 = arith.constant 0 : i32
    %2 = arith.cmpi ne, %1, %c0_i32_0 : i32
    scf.if %2 {
      %cst_9 = arith.constant 0.000000e+00 : f32
      %13 = vector.broadcast %cst_9 : f32 to vector<16x128xf32>
      %c0_10 = arith.constant 0 : index
      %c0_11 = arith.constant 0 : index
      %14 = vector.load %arg6[%c0_10, %c0_11] : memref<16x128xf32, #tpu.memory_space<vmem>>, vector<16x128xf32>
      tpu.vector_store %arg6[%c0_10, %c0_11], %13 {strides = array<i32>} : memref<16x128xf32, #tpu.memory_space<vmem>>, vector<16x128xf32>,
    } else {
    }
    %c0 = arith.constant 0 : index
    %c0_1 = arith.constant 0 : index
    %3 = vector.load %arg6[%c0, %c0_1] : memref<16x128xf32, #tpu.memory_space<vmem>>, vector<16x128xf32>
    %c0_2 = arith.constant 0 : index
    %c0_3 = arith.constant 0 : index
    %4 = vector.load %arg3[%c0_2, %c0_3] : memref<16x384xf32, #tpu.memory_space<vmem>>, vector<16x384xf32>
    %5 = arith.truncf %4 : vector<16x384xf32> to vector<16x384xbf16>
    %c0_4 = arith.constant 0 : index
    %c0_5 = arith.constant 0 : index
    %6 = vector.load %arg4[%c0_4, %c0_5] : memref<384x128xbf16, #tpu.memory_space<vmem>>, vector<384x128xbf16>
    %cst = arith.constant dense<0.000000e+00> : vector<16x128xf32>
    %7 = tpu.matmul %5, %6, %cst {dimension_numbers = #tpu.dot_dimension_numbers<[1], [0], [0], [1], [0, 0, 1, 1], [], []>} : vector<16x384xbf16>, vector<384x128xbf16>, vector<16x128xf32> -> vector<16x128xf32>
    %8 = arith.addf %3, %7 : vector<16x128xf32>
    %c0_6 = arith.constant 0 : index
    %c0_7 = arith.constant 0 : index
    %9 = vector.load %arg6[%c0_6, %c0_7] : memref<16x128xf32, #tpu.memory_space<vmem>>, vector<16x128xf32>
    tpu.vector_store %arg6[%c0_6, %c0_7], %8 {strides = array<i32>} : memref<16x128xf32, #tpu.memory_space<vmem>>, vector<16x128xf32>,
    %c1_i32 = arith.constant 1 : i32
    %10 = arith.cmpi eq, %arg2, %c1_i32 : i32
    %11 = arith.extui %10 : i1 to i32
    %c0_i32_8 = arith.constant 0 : i32
    %12 = arith.cmpi ne, %11, %c0_i32_8 : i32
    scf.if %12 {
      %c0_9 = arith.constant 0 : index
      %c0_10 = arith.constant 0 : index
      %13 = vector.load %arg6[%c0_9, %c0_10] : memref<16x128xf32, #tpu.memory_space<vmem>>, vector<16x128xf32>
      %14 = arith.truncf %13 : vector<16x128xf32> to vector<16x128xbf16>
      %c0_11 = arith.constant 0 : index
      %c0_12 = arith.constant 0 : index
      %15 = vector.load %arg5[%c0_11, %c0_12] : memref<16x128xbf16, #tpu.memory_space<vmem>>, vector<16x128xbf16>
      tpu.vector_store %arg5[%c0_11, %c0_12], %14 {strides = array<i32>} : memref<16x128xbf16, #tpu.memory_space<vmem>>, vector<16x128xbf16>,
    } else {
    }
    return
  }
  func.func @transform_0(%arg0: i32, %arg1: i32, %arg2: i32) -> (i32, i32) {
    %c0_i32 = arith.constant 0 : i32
    return %arg0, %arg2 : i32, i32
  }
  func.func @transform_1(%arg0: i32, %arg1: i32, %arg2: i32) -> (i32, i32) {
    %c0_i32 = arith.constant 0 : i32
    return %arg2, %arg1 : i32, i32
  }
  func.func @transform_2(%arg0: i32, %arg1: i32, %arg2: i32) -> (i32, i32) {
    %c0_i32 = arith.constant 0 : i32
    return %arg0, %arg1 : i32, i32
  }
}

</mosaic_0001>

<bundles_post_ra>
// kernel: tpu_custom_call.1
= control target key start
LH: loop header
LB: loop body
LE: loop exit
PB: predicated region body
PF: predicated region fallthrough
CT: control target
= control target key end

     0   :  { %7 = vsyncpa [#allocation4], 0  ;;  %s1253_s0 = inlined_call_operand.hbm [shape: f32[16,768], index: 0, kind: input, shape index: {}]   ;;  %s1254_s1 = inlined_call_operand.hbm [shape: bf16[768,128], index: 1, kind: input, shape index: {}]   ;;  %s1255_s2 = inlined_call_operand.hbm [shape: bf16[16,128], index: 2, kind: output, shape index: {}]  }
   0x1   :  { %9 = vsyncpa [#allocation4 + $0x1], 0 }
   0x2   :  { %10 = vsyncpa [#allocation7], 0 }
   0x3   :  { %12 = vsyncpa [#allocation7 + $0x1], 0 }
   0x4   :  { %13 = vsyncpa [#allocation5], 0  ;;  %s1024_s9 = smov 0   ;;  %s1026_s10 = smov 0  }
   0x5   :  { %s1028_s11 = smov 0   ;;  %s1030_s12 = smov 0  }
   0x6   :  { %s1032_s13 = smov 0   ;;  %s1034_s14 = smov 0  }
   0x7 LB: > { %s647_s15 = sadd.s32 4294967295, %s994_s14   ;;  %s31_s16 = sadd.s32 1, %s990_s13  ;;  %s994_s14 = sphi %s1034_s14, %s19_s14   ;;  %s990_s13 = sphi %s1032_s13, %s1267_s13   ;;  %s986_s12 = sphi %s1030_s12, %s1266_s12   ;;  %s982_s11 = sphi %s1028_s11, %s1265_s11   ;;  %s978_s10 = sphi %s1026_s10, %s1264_s10   ;;  %s974_s9 = sphi %s1024_s9, %s1263_s9  }
   0x8   : > { %p32_p0 = scmp.ge.s32.totalorder %s31_s16, 2  ;;  %s47_s17 = sadd.s32 1, %s982_s11 }
   0x9   : > { %p54_p1 = scmp.ne.s32.totalorder %s982_s11, %s978_s10  ;;  %p55_p2 = scmp.eq.s32.totalorder %s994_s14, 0 }
   0xa   : > { %s1269_s16 = smov (%p32_p0, %s31_s16), 0  ;;  %p60_p4 = scmp.ne.s32.totalorder %s978_s10, %s974_s9 }
   0xb   : > { %p56_p3 = por %p55_p2, %p54_p1  ;;  %s43_s18 = ssub.s32 %s990_s13, %s1269_s16 }
   0xc   : > { %p61_p5 = scmp.eq.s32.totalorder %s647_s15, 0  ;;  %p45_p6 = scmp.eq.s32.totalorder %s43_s18, 0 }
   0xd   : > { %p764_p8 = scmp.lt.s32.totalorder %s994_s14, 2  ;;  %s1074_s21 = sand.u32 1, %s982_s11  }
   0xe   : > { %p1065_p7 = por %p61_p5, %p60_p4  ;;  %s685_s22 = smul.u32 384, %s990_s13 }
   0xf   : > { %s1071_s20 = scalar_select %p45_p6, %s982_s11, %s47_s17  }
  0x10   : > { %s1257_s19 = scalar_select %p1065_p7, 1, 0 }
  0x11   : > { %s745_s23 = smul.u32 48, %s1074_s21  ;;  %s1081_s26 = scalar_lea.hbm %s1253_s0, %s685_s22 }
  0x12   : > { %p1083_p9 = pnand %p764_p8, %p56_p3  ;;  %s141_s30 = scalar_lea.sflag [#allocation4], %s1074_s21 }
  0x13   : > { %s144_s28 = scalar_lea.vmem [#allocation3], %s745_s23  ;;  %s850_s3 = scalar_lea.hbm %s1081_s26, 768 }
  0x14   : > { %s154_s29 = sshll.u32 %s144_s28, 4  ;;  %p851_p11 = scmp.ne.s32.totalorder %s1081_s26, %s850_s3  ;;  %s1087_s29 = int_to_ptr.vmem [resolvable:$true] %s154_s29 }
  0x15   : > { %p852_p12 = pneg %p1083_p9  ;;  %s855_s6 = scalar_lea.hbm %s1253_s0, 1536 }
  0x16   : > { %p856_p1 = scmp.lt.u32.totalorder %s1081_s26, %s1253_s0  ;;  %p857_p2 = scmp.lt.u32.totalorder %s855_s6, %s850_s3 }
  0x17   : > { %p853_p13 = pnand %p852_p12, %p851_p11  ;;  %p859_p4 = scmp.lt.u32.totalorder %s850_s3, %s1081_s26 }
  0x18   : > { %p858_p3 = por %p857_p2, %p856_p1 }
  0x19   : > { %p854_p0 = pneg %p853_p13 }
  0x1a   : > { %p860_p5 = por %p859_p4, %p858_p3 }
  0x1c   : > { %p861_p6 = pnand %p860_p5, %p854_p0 }
  0x1e   : > { %864 = shalt.err (!%p861_p6)
}
  0x1f   : > { %s865_s9 = scalar_lea.vmem %s1087_s29, 768  ;;  %s996_s17 = smov [#allocation3]  }
  0x20   : > { %p866_p8 = scmp.ne.s32.totalorder %s1087_s29, %s865_s9  ;;  %s870_s18 = sshll.u32 %s996_s17, 4  ;;  %s871_s18 = int_to_ptr.vmem [resolvable:$false] %s870_s18 }
  0x21   : > { %s872_s22 = scalar_lea.vmem %s871_s18, 1536  ;;  %p873_p10 = scmp.lt.s32.totalorder %s1087_s29, %s871_s18 }
  0x22   : > { %p868_p11 = pnand %p866_p8, %p852_p12  ;;  %p874_p1 = scmp.lt.s32.totalorder %s872_s22, %s865_s9 }
  0x24   : > { %p869_p13 = pneg %p868_p11  ;;  %p875_p2 = por %p874_p1, %p873_p10 }
  0x26   : > { %p876_p3 = pnand %p875_p2, %p869_p13 }
  0x28   : > { %879 = shalt.err (!%p876_p3)
}
  0x29   : > { %s997_s23 = smov 768   ;;  %s998_s24 = smov 384  }
  0x2a   : > { %s999_s25 = smov 24   ;;  %p184_p0 = scmp.lt.s32.totalorder %s994_s14, 3 }
  0x2b   : > { %760 = dma.hbm_to_vmem [thread:$0]  (!%p1083_p9), %s1081_s26, 768, %s1087_s29, %s141_s30, %s997_s23, %s998_s24, %s999_s25  }
  0x2c   : > { %s746_s28 = smul.u32 192, %s1074_s21  ;;  %p1259_p10 = scmp.ge.s32.totalorder %s994_s14, 1 }
  0x2d   : > { %s686_s4 = smul.u32 3072, %s990_s13  ;;  %s165_s26 = scalar_lea.sflag [#allocation7], %s1074_s21 }
  0x2e   : > { %p1122_p4 = pnand %p1259_p10, %p184_p0  ;;  %s168_s8 = scalar_lea.vmem [#allocation6], %s746_s28 }
  0x2f   : > { %s1130_s7 = scalar_lea.hbm %s1254_s1, %s686_s4  ;;  %s176_s9 = sshll.u32 %s168_s8, 4  ;;  %s1132_s9 = int_to_ptr.vmem [resolvable:$true] %s176_s9 }
  0x30   : > { %s880_s29 = scalar_lea.hbm %s1130_s7, 3072  ;;  %s885_s18 = scalar_lea.hbm %s1254_s1, 6144 }
  0x31   : > { %p881_p5 = scmp.ne.s32.totalorder %s1130_s7, %s880_s29  ;;  %p886_p11 = scmp.lt.u32.totalorder %s1130_s7, %s1254_s1 }
  0x32   : > { %p887_p13 = scmp.lt.u32.totalorder %s885_s18, %s880_s29  ;;  %p889_p2 = scmp.lt.u32.totalorder %s880_s29, %s1130_s7 }
  0x33   : > { %p883_p6 = pnand %p881_p5, %p852_p12 }
  0x34   : > { %p888_p1 = por %p887_p13, %p886_p11 }
  0x35   : > { %p884_p8 = pneg %p883_p6 }
  0x36   : > { %p890_p3 = por %p889_p2, %p888_p1 }
  0x38   : > { %p891_p0 = pnand %p890_p3, %p884_p8 }
  0x3a   : > { %894 = shalt.err (!%p891_p0)
}
  0x3b   : > { %s895_s24 = scalar_lea.vmem %s1132_s9, 3072  ;;  %s1000_s25 = smov [#allocation6]  }
  0x3c   : > { %p896_p10 = scmp.ne.s32.totalorder %s1132_s9, %s895_s24  ;;  %s900_s28 = sshll.u32 %s1000_s25, 4  ;;  %s901_s28 = int_to_ptr.vmem [resolvable:$false] %s900_s28 }
  0x3d   : > { %s902_s4 = scalar_lea.vmem %s901_s28, 6144  ;;  %p903_p7 = scmp.lt.s32.totalorder %s1132_s9, %s901_s28 }
  0x3e   : > { %p898_p5 = pnand %p896_p10, %p852_p12  ;;  %p904_p11 = scmp.lt.s32.totalorder %s902_s4, %s895_s24 }
  0x40   : > { %p899_p6 = pneg %p898_p5  ;;  %p905_p13 = por %p904_p11, %p903_p7 }
  0x42   : > { %p906_p1 = pnand %p905_p13, %p899_p6 }
  0x44   : > { %909 = shalt.err (!%p906_p1)
}
  0x45   : > { %s1001_s5 = smov 64   ;;  %s1002_s6 = smov 4  }
  0x46   : > { %763 = dma.hbm_to_vmem [thread:$0]  (!%p1083_p9), %s1130_s7, 3072, %s1132_s9, %s165_s26, %s1001_s5, %s1001_s5, %s1002_s6  }
  0x47   : > { %188 = sbr.rel (%p1122_p4) target bundleno = 383 (0x17f), region = 28  ;;  %s190_s8 = sand.u32 (!%p1122_p4), 1, %s978_s10  }
  0x48   : > { %s747_s29 = smul.u32 (!%p1122_p4), 48, %s190_s8  ;;  %s191_s30 = scalar_lea.sflag (!%p1122_p4), [#allocation4], %s190_s8 }
  0x49   : > { %p1261_p7 = scmp.ne.s32.totalorder (!%p1122_p4), %s1257_s19, 0 }
  0x4a   : > { %s1163_s17 = scalar_lea.vmem (!%p1122_p4), [#allocation3], %s747_s29 }
  0x4e   : > { %961 = dma.done.wait (%p1261_p7), %s191_s30, 768  }
  0x4f   : > { %963 = vsyncadd (%p1261_p7), %s191_s30, 4294966528  ;;  %s748_s18 = smul.u32 192, %s190_s8  ;;  %s200_s27 = scalar_lea.sflag [#allocation7], %s190_s8 }
  0x51   : > { %s1169_s21 = scalar_lea.vmem [#allocation6], %s748_s18 }
  0x52   : > { %965 = dma.done.wait (%p1261_p7), %s200_s27, 3072  }
  0x53   : > { %967 = vsyncadd (%p1261_p7), %s200_s27, 4294964224  ;;  %p653_p9 = scmp.ne.s32.totalorder %s986_s12, 0 }
  0x54   : > { %v1003_v0 = vmov (!%p653_p9), 0.0  }
  0x55   : > { %232 = sbr.rel (%p653_p9) target bundleno = 92 (0x5c), region = 40  ;;  %233 = vst [vmem:[#allocation2] sm:$0xff] (!%p653_p9), %v1003_v0  ;;  %234 = vst [vmem:[#allocation2 + $0x8] sm:$0xff] (!%p653_p9), %v1003_v0 }
  0x5c PF: > { %v826_v1 = vld [vmem:[%s1169_s21 + $0x40] sm:$0xff]   ;;  %v1004_v2 = vmov 0.0   ;;  %vm1005_vm0 = vmmov 0   ;;  %v829_v5 = vld [vmem:[%s1169_s21 + $0x48] sm:$0xff]   ;;  %v832_v8 = vld [vmem:[%s1169_s21 + $0x50] sm:$0xff]   ;;  %p678_p12 = scmp.ne.s32.totalorder %s986_s12, 1 }
  0x5d   : > { %725 = vmatprep.subr.bf16.mxu1 %v1004_v2  ;;  %v827_v3 = vld [vmem:[%s1169_s21] sm:$0xff]   ;;  %694 = vmatprep.subr.bf16.mxu0 %v826_v1  ;;  %v830_v6 = vld [vmem:[%s1169_s21 + $0x8] sm:$0xff]   ;;  %v833_v9 = vld [vmem:[%s1169_s21 + $0x10] sm:$0xff]  }
  0x5e   : > { %v828_v4 = vld [vmem:[%s1169_s21 + $0x80] sm:$0xff]   ;;  %741 = vmatprep.mubr.msk.bf16.mxu1 %vm1005_vm0, %v1004_v2  ;;  %695 = vmatpush3.bf16.msra.mxu0 %v827_v3  ;;  %v831_v7 = vld [vmem:[%s1169_s21 + $0x88] sm:$0xff]   ;;  %v834_v10 = vld [vmem:[%s1169_s21 + $0x90] sm:$0xff]  }
  0x5f   : > { %726 = vmatpush3.bf16.msra.mxu1 %v828_v4  ;;  %696 = vmatprep.subr.bf16.mxu0 %v829_v5  ;;  %v835_v11 = vld [vmem:[%s1169_s21 + $0x58] sm:$0xff]   ;;  %v838_v14 = vld [vmem:[%s1169_s21 + $0x60] sm:$0xff]   ;;  %v841_v17 = vld [vmem:[%s1169_s21 + $0x68] sm:$0xff]  }
  0x60   : > { %727 = vmatprep.subr.bf16.mxu1 %v1004_v2  ;;  %v836_v12 = vld [vmem:[%s1169_s21 + $0x18] sm:$0xff]   ;;  %v839_v15 = vld [vmem:[%s1169_s21 + $0x20] sm:$0xff]   ;;  %v842_v18 = vld [vmem:[%s1169_s21 + $0x28] sm:$0xff]  }
  0x61   : > { %v837_v13 = vld [vmem:[%s1169_s21 + $0x98] sm:$0xff]   ;;  %v840_v16 = vld [vmem:[%s1169_s21 + $0xa0] sm:$0xff]   ;;  %v843_v19 = vld [vmem:[%s1169_s21 + $0xa8] sm:$0xff]  }
  0x62   : > { %697 = vmatpush3.bf16.msra.mxu0 %v830_v6  ;;  %v844_v20 = vld [vmem:[%s1169_s21 + $0x70] sm:$0xff]   ;;  %v847_v23 = vld [vmem:[%s1169_s21 + $0x78] sm:$0xff]  }
  0x63   : > { %728 = vmatpush3.bf16.msra.mxu1 %v831_v7  ;;  %698 = vmatprep.subr.bf16.mxu0 %v832_v8  ;;  %v845_v21 = vld [vmem:[%s1169_s21 + $0x30] sm:$0xff]   ;;  %v238_v24 = vld [vmem:[%s1163_s17 + $0x8] sm:$0xff]  ;;  %v240_v29 = vld [vmem:[%s1163_s17 + $0x18] sm:$0xff] }
  0x64   : > { %729 = vmatprep.subr.bf16.mxu1 %v1004_v2  ;;  %v846_v22 = vld [vmem:[%s1169_s21 + $0xb0] sm:$0xff]   ;;  %v848_v27 = vld [vmem:[%s1169_s21 + $0x38] sm:$0xff]  }
  0x65   : > { %v241_v25 = vld [vmem:[%s1163_s17 + $0x20] sm:$0xff]  ;;  %v849_v30 = vld [vmem:[%s1169_s21 + $0xb8] sm:$0xff]   ;;  %v239_v31 = vld [vmem:[%s1163_s17 + $0x10] sm:$0xff] }
  0x66   : > { %699 = vmatpush3.bf16.msra.mxu0 %v833_v9  ;;  %v244_v26 = vpack.c.bf16 %v241_v25, %v238_v24  ;;  %v237_v28 = vld [vmem:[%s1163_s17] sm:$0xff]  ;;  %v242_v32 = vld [vmem:[%s1163_s17 + $0x28] sm:$0xff] }
  0x67   : > { %730 = vmatpush3.bf16.msra.mxu1 %v834_v10  ;;  %700 = vmatprep.subr.bf16.mxu0 %v835_v11  ;;  %v243_v33 = vpack.c.bf16 %v240_v29, %v237_v28  ;;  %v245_v34 = vpack.c.bf16 %v242_v32, %v239_v31  ;;  %v235_v41 = vld [vmem:[#allocation2] sm:$0xff]  ;;  %v236_v47 = vld [vmem:[#allocation2 + $0x8] sm:$0xff] }
  0x68   : > { %731 = vmatprep.subr.bf16.mxu1 %v1004_v2  ;;  %470 = vmatprep.mubr.bf16.mxu0 %v244_v26 }
  0x6a   : > { %701 = vmatpush3.bf16.msra.mxu0 %v836_v12 }
  0x6b   : > { %732 = vmatpush3.bf16.msra.mxu1 %v837_v13  ;;  %702 = vmatprep.subr.bf16.mxu0 %v838_v14 }
  0x6c   : > { %733 = vmatprep.subr.bf16.mxu1 %v1004_v2 }
  0x6e   : > { %703 = vmatpush3.bf16.msra.mxu0 %v839_v15 }
  0x6f   : > { %734 = vmatpush3.bf16.msra.mxu1 %v840_v16  ;;  %704 = vmatprep.subr.bf16.mxu0 %v841_v17 }
  0x70   : > { %735 = vmatprep.subr.bf16.mxu1 %v1004_v2 }
  0x72   : > { %705 = vmatpush3.bf16.msra.mxu0 %v842_v18 }
  0x73   : > { %736 = vmatpush3.bf16.msra.mxu1 %v843_v19  ;;  %706 = vmatprep.subr.bf16.mxu0 %v844_v20 }
  0x74   : > { %737 = vmatprep.subr.bf16.mxu1 %v1004_v2 }
  0x76   : > { %707 = vmatpush3.bf16.msra.mxu0 %v845_v21 }
  0x77   : > { %738 = vmatpush3.bf16.msra.mxu1 %v846_v22  ;;  %708 = vmatprep.subr.bf16.mxu0 %v847_v23 }
  0x78   : > { %739 = vmatprep.subr.bf16.mxu1 %v1004_v2 }
  0x7a   : > { %709 = vmatpush3.bf16.msra.mxu0 %v848_v27 }
  0x7b   : > { %740 = vmatpush3.bf16.msra.mxu1 %v849_v30 }
  0x7d   : > { %471 = vmatmul.mubr.bf16.vlgmr.msra.gmra.mrb[0].mxu0 %v243_v33 }
  0x7e   : > { %742 = vmatmul.mubr.bf16.vlgmr.msra.gmra.mrb[0].mxu1 %v245_v34 }
 0x150   : > { %v710_v35 = vpop.f32.mrb[0].mxu0 }
 0x151   : > { %v513_v36 = vpop.f32.mrb[0].mxu1  ;;  %v711_v37 = vpop.f32.mrb[1].mxu0 }
 0x152   : > { %v712_v38 = vadd.f32 %v711_v37, %v710_v35  ;;  %v743_v39 = vpop.f32.mrb[1].mxu1  ;;  %v713_v40 = vpop.f32.mrb[2].mxu0 }
 0x153   : > { %v516_v42 = vpop.f32.mrb[2].mxu1  ;;  %v714_v43 = vpop.f32.mrb[3].mxu0 }
 0x154   : > { %v514_v44 = vadd.f32 %v712_v38, %v513_v36  ;;  %v715_v45 = vadd.f32 %v714_v43, %v713_v40  ;;  %v744_v46 = vpop.f32.mrb[3].mxu1  ;;  %527 = sbr.rel (%p678_p12) target bundleno = 357 (0x165), region = 44 }
 0x156   : > { %v520_v48 = vadd.f32 %v514_v44, %v235_v41  ;;  %v517_v49 = vadd.f32 %v715_v45, %v516_v42 }
 0x158   : > { %522 = vst [vmem:[#allocation2] sm:$0xff] %v520_v48  ;;  %v521_v50 = vadd.f32 %v517_v49, %v236_v47 }
 0x15a   : > { %523 = vst [vmem:[#allocation2 + $0x8] sm:$0xff] %v521_v50 }
 0x15f   : > { %v528_v51 = vld [vmem:[#allocation2] sm:$0xff] }
 0x161   : > { %v529_v52 = vld [vmem:[#allocation2 + $0x8] sm:$0xff] }
 0x162   : > { %v692_v53 = vpack.c.bf16 %v529_v52, %v528_v51 }
 0x164   : > { %693 = vst [vmem:[#allocation8] sm:$0xff] %v692_v53  }
 0x165 PF: > { %p1209_p4 = scmp.eq.s32.totalorder %s647_s15, 1  ;;  %s1006_s3 = smov [#allocation8]  }
 0x166   : > { %s550_s7 = sshll.u32 %s1006_s3, 4  ;;  %s551_s7 = int_to_ptr.vmem [resolvable:$true] %s550_s7 }
 0x167   : > { %s910_s9 = scalar_lea.vmem %s551_s7, 128  ;;  %p917_p0 = scmp.lt.s32.totalorder %s551_s7, %s551_s7 }
 0x168   : > { %p911_p8 = scmp.ne.s32.totalorder %s551_s7, %s910_s9  ;;  %p918_p10 = scmp.lt.s32.totalorder %s910_s9, %s910_s9 }
 0x16a   : > { %p912_p2 = pnand %p911_p8, %p1209_p4  ;;  %p919_p5 = por %p918_p10, %p917_p0 }
 0x16c   : > { %p913_p3 = pneg %p912_p2 }
 0x16e   : > { %p920_p6 = pnand %p919_p5, %p913_p3 }
 0x170   : > { %923 = shalt.err (!%p920_p6)
}
 0x171   : > { %s924_s15 = scalar_lea.hbm %s1255_s2, 128 }
 0x172   : > { %p925_p11 = scmp.ne.s32.totalorder %s1255_s2, %s924_s15  ;;  %p930_p7 = scmp.lt.u32.totalorder %s924_s15, %s1255_s2 }
 0x174   : > { %p926_p13 = pnand %p925_p11, %p1209_p4 }
 0x176   : > { %p927_p1 = pneg %p926_p13 }
 0x178   : > { %p932_p9 = pnand %p930_p7, %p927_p1 }
 0x17a   : > { %935 = shalt.err (!%p932_p9)
}
 0x17b   : > { %s1007_s28 = smov 64   ;;  %s1008_s4 = smov 4  }
 0x17c   : > { %754 = dma.vmem_to_hbm [thread:$0]  (%p1209_p4), %s551_s7, 128, %s1255_s2, [#allocation5], %s1007_s28, %s1007_s28, %s1008_s4  }
 0x17d   : > { %969 = dma.done.wait (%p1209_p4), [#allocation5], 128  }
 0x17e   : > { %971 = vsyncadd (%p1209_p4), [#allocation5], 4294967168 }
 0x17f PF: > { %s19_s14 = sadd.s32 1, %s994_s14   ;;  %s1263_s9 = smov %s978_s10 }
 0x180   : > { %p16_p12 = scmp.ge.s32.totalorder %s19_s14, 4   ;;  %s1264_s10 = smov %s982_s11 }
 0x181   : > { %s1265_s11 = smov %s1071_s20  ;;  %s1266_s12 = smov %s990_s13 }
 0x182   : > { %s1267_s13 = smov %s1269_s16  ;;  %18 = sbr.rel (!%p16_p12) target bundleno = 7 (0x7), region = 87 }
 0x189   :  { %566 = vsyncpa [#allocation4], 1 }
 0x18a   :  { %568 = vsyncpa [#allocation4 + $0x1], 1 }
 0x18b   :  { %569 = vsyncpa [#allocation7], 1 }
 0x18c   :  { %571 = vsyncpa [#allocation7 + $0x1], 1 }
 0x18d   :  { %572 = vsyncpa [#allocation5], 1 }
 0x18e   :  { %574 = vsyncpa [#allocation5 + $0x1], 1 }

</bundles_post_ra>
